<compile_context>
chip_gen: v6e
topology: v6e:2x2x1
jax: 0.10.0
libtpu: 0.0.40
codegen_flags: <defaults>
</compile_context>

<pallas_src>
import functools
import math

import jax
import jax.numpy as jnp
import numpy as np
from jax.experimental import pallas as pl
from jax.experimental.pallas import tpu as pltpu


def sparse_attention_kernel(x_ref, w1_ref, b1_ref, wo_ref, bo_ref, o_ref):
    """One (tm, L) row tile; L = pack * D lanes (128 when tokens are packed).

    w1: (L, 2L) fused [v | qk] projection (block-diagonal per packed token; every
        qk column equals colsum(Wk^T) so qk arrives already broadcast per token).
    wo: (L, L) block-diagonal output projection.  Biases are kept in f32.
    """
    x = x_ref[...]
    h = jnp.dot(x, w1_ref[...], preferred_element_type=jnp.float32)
    h = h + b1_ref[...]                       # f32 accumulator
    L = wo_ref.shape[0]
    v = h[:, :L]                              # vreg-aligned lane slice (L == 128)
    qk = h[:, L:]
    g = jnp.maximum(v, 0.0) * qk              # relu(v) * qk, per token
    out = jnp.dot(g.astype(wo_ref.dtype), wo_ref[...],
                  preferred_element_type=jnp.float32)
    o_ref[...] = (out + bo_ref[...]).astype(o_ref.dtype)


def _round_up(a, b):
    return ((a + b - 1) // b) * b


def _pack_factor(d):
    # Pack p tokens per 128-lane row when D divides 128; otherwise fall back to 1
    # (correct, just not lane-dense).
    if d <= 128 and 128 % d == 0:
        return 128 // d
    return 1


@functools.partial(jax.jit, static_argnames=("tile_m", "operand_dtype"))
def sparse_attention(x, params, *, tile_m=2048, operand_dtype=None):
    """x: (B, N, D) float32/bfloat16.  Matches the PyTorch module (incl. .squeeze(0))."""
    B, N, D = x.shape
    M = B * N
    out_dtype = x.dtype
    dtype = jnp.dtype(operand_dtype) if operand_dtype is not None else jnp.dtype(x.dtype)

    p = _pack_factor(D)
    L = p * D

    # ---- pack tokens: (B, N, D) -> (m_rows, L).  Free row-major reshape except for
    # a tiny tail pad when M is not a multiple of the pack factor.
    x2 = x.reshape(M, D)
    Mp = _round_up(M, p)
    if Mp != M:
        x2 = jnp.pad(x2, ((0, Mp - M), (0, 0)))
    m_rows = Mp // p
    xp = x2.reshape(m_rows, L).astype(dtype)

    # ---- pack weights (torch layout: w is (out, in); y = x @ w.T + b).
    f32 = jnp.float32
    eye = jnp.eye(p, dtype=f32)
    wv_t = params["wv"].T.astype(f32)                       # (D, D)
    wo_t = params["wo"].T.astype(f32)                       # (D, D)
    u = params["wk"].astype(f32).sum(axis=0)                # (D,)  qk = x @ u + c
    c = params["bk"].astype(f32).sum()                      # ()
    wv_p = jnp.kron(eye, wv_t)                              # (L, L)
    wqk_p = jnp.kron(eye, jnp.tile(u[:, None], (1, D)))     # (L, L): each qk col == u
    w1 = jnp.concatenate([wv_p, wqk_p], axis=1).astype(dtype)          # (L, 2L)
    b1 = jnp.concatenate([jnp.tile(params["bv"].astype(f32), p),
                          jnp.full((L,), c, dtype=f32)]).reshape(1, 2 * L)
    wo_p = jnp.kron(eye, wo_t).astype(dtype)                # (L, L)
    bo_p = jnp.tile(params["bo"].astype(f32), p).reshape(1, L)

    # ---- grid: large lane-dense row tiles; partial last block is masked by Pallas.
    tm = _round_up(max(8, min(tile_m, m_rows)), 8)
    grid = pl.cdiv(m_rows, tm)

    itemsize = dtype.itemsize
    flops = 2 * m_rows * L * (2 * L) + 2 * m_rows * L * L
    bytes_accessed = (m_rows * L * itemsize                               # x
                      + m_rows * L * jnp.dtype(out_dtype).itemsize        # out
                      + (L * 2 * L + L * L) * itemsize + 3 * L * 4)       # weights/biases

    out_p = pl.pallas_call(
        sparse_attention_kernel,
        out_shape=jax.ShapeDtypeStruct((m_rows, L), out_dtype),
        grid_spec=pltpu.PrefetchScalarGridSpec(
            num_scalar_prefetch=0,
            grid=(grid,),
            in_specs=[
                pl.BlockSpec((tm, L), lambda i: (i, 0)),        # packed x rows
                pl.BlockSpec((L, 2 * L), lambda i: (0, 0)),     # fused v|qk weight
                pl.BlockSpec((1, 2 * L), lambda i: (0, 0)),     # fused bias (f32)
                pl.BlockSpec((L, L), lambda i: (0, 0)),         # out-proj weight
                pl.BlockSpec((1, L), lambda i: (0, 0)),         # out-proj bias (f32)
            ],
            out_specs=pl.BlockSpec((tm, L), lambda i: (i, 0)),
        ),
        compiler_params=pltpu.CompilerParams(
            dimension_semantics=("parallel",)),
        cost_estimate=pl.CostEstimate(
            flops=int(flops), transcendentals=0, bytes_accessed=int(bytes_accessed)),
    )(xp, w1, b1, wo_p, bo_p)

    # ---- unpack: free bitcast back to (M, D); slice only if we padded.
    out2 = out_p.reshape(Mp, D)
    if Mp != M:
        out2 = out2[:M]
    out = out2.reshape(B, N, D)
    if B == 1:                      # torch .squeeze(0)
        out = out[0]
    return out


def init_params(key, dim):
    """Deterministic init matching the module's _init_weights:
    xavier_normal_ for Linear weights (shape (out, in)), normal(std=1e-6) biases."""
    ks = jax.random.split(key, 8)

    def xavier_normal(k, out_f, in_f):
        std = math.sqrt(2.0 / (in_f + out_f))
        return std * jax.random.normal(k, (out_f, in_f), dtype=jnp.float32)

    return {
        "wq": xavier_normal(ks[0], 1, dim),
        "bq": 1e-6 * jax.random.normal(ks[1], (1,), dtype=jnp.float32),
        "wk": xavier_normal(ks[2], dim, dim),
        "bk": 1e-6 * jax.random.normal(ks[3], (dim,), dtype=jnp.float32),
        "wv": xavier_normal(ks[4], dim, dim),
        "bv": 1e-6 * jax.random.normal(ks[5], (dim,), dtype=jnp.float32),
        "wo": xavier_normal(ks[6], dim, dim),
        "bo": 1e-6 * jax.random.normal(ks[7], (dim,), dtype=jnp.float32),
    }


def reference_forward(x, p):
    """Pure-JAX reference mirroring the PyTorch forward line by line
    (including the q projection + softmax, which evaluates to exactly 1.0)."""
    q = x @ p["wq"].T + p["bq"]
    k = x @ p["wk"].T + p["bk"]
    v = x @ p["wv"].T + p["bv"]
    q = jax.nn.softmax(q, axis=-1)               # size-1 axis -> ones
    qk = jnp.sum(k * q, axis=-1, keepdims=True)
    v = jnp.maximum(v, 0.0)
    out = v * qk
    if out.shape[0] == 1:
        out = out[0]                             # .squeeze(0)
    return out @ p["wo"].T + p["bo"]


if __name__ == "__main__":
    key = jax.random.PRNGKey(0)

    # Case 1: B=2, N=8, D=32 -- small, token count a multiple of the pack factor.
    B, N, D = 2, 8, 32
    kx, kp, key = jax.random.split(key, 3)
    x = jax.random.normal(kx, (B, N, D), dtype=jnp.float32)
    params = init_params(kp, D)
    out = jax.block_until_ready(sparse_attention(x, params))
    ref = reference_forward(x, params)
    np.testing.assert_allclose(np.asarray(out), np.asarray(ref), rtol=1e-4, atol=1e-5)

    # Case 2: B=1 (exercises .squeeze(0)) with N=50 (exercises the tiny tail pad to
    # a multiple of the pack factor and a single partial block).
    B2, N2, D2 = 1, 50, 32
    kx2, kp2, key = jax.random.split(key, 3)
    x2 = jax.random.normal(kx2, (B2, N2, D2), dtype=jnp.float32)
    params2 = init_params(kp2, D2)
    out2 = jax.block_until_ready(sparse_attention(x2, params2))
    ref2 = reference_forward(x2, params2)
    np.testing.assert_allclose(np.asarray(out2), np.asarray(ref2), rtol=1e-4, atol=1e-5)

    # Case 3: multi-step grid with a partial last block (small tile_m forces it).
    B3, N3, D3 = 2, 520, 32
    kx3, kp3, key = jax.random.split(key, 3)
    x3 = jax.random.normal(kx3, (B3, N3, D3), dtype=jnp.float32)
    params3 = init_params(kp3, D3)
    out3 = jax.block_until_ready(sparse_attention(x3, params3, tile_m=64))
    ref3 = reference_forward(x3, params3)
    np.testing.assert_allclose(np.asarray(out3), np.asarray(ref3), rtol=1e-4, atol=1e-5)

    # Case 3b: bf16-operand path (halved HBM traffic) -- loose sanity check only;
    # the f32 path above is the tight correctness check.
    out3_bf16 = jax.block_until_ready(
        sparse_attention(x3, params3, tile_m=64, operand_dtype=jnp.bfloat16))
    rel_err = float(jnp.max(jnp.abs(out3_bf16.astype(jnp.float32) - ref3))
                    / (jnp.max(jnp.abs(ref3)) + 1e-6))
    assert rel_err < 5e-2, f"bf16 path relative error too large: {rel_err}"

    print("KERNEL_OK")
</pallas_src>

<mosaic_0001>
module attributes {stable_mosaic.version = 11 : i64} {
  func.func @sparse_attention_kernel(%arg0: i32, %arg1: memref<8x128xf32, #tpu.memory_space<vmem>>, %arg2: memref<128x256xf32, #tpu.memory_space<vmem>>, %arg3: memref<1x256xf32, #tpu.memory_space<vmem>>, %arg4: memref<128x128xf32, #tpu.memory_space<vmem>>, %arg5: memref<1x128xf32, #tpu.memory_space<vmem>>, %arg6: memref<8x128xf32, #tpu.memory_space<vmem>>) attributes {dimension_semantics = [#tpu.dimension_semantics<parallel>], iteration_bounds = array<i64: 1>, scalar_prefetch = 0 : i64, scratch_operands = 0 : i64, tpu.core_type = #tpu.core_type<tc>, window_params = [{transform_indices = @transform_0, window_bounds = array<i64: 8, 128>}, {pipeline_mode = #tpu.pipeline_mode<synchronous>, transform_indices = @transform_1, window_bounds = array<i64: 128, 256>}, {pipeline_mode = #tpu.pipeline_mode<synchronous>, transform_indices = @transform_2, window_bounds = array<i64: 1, 256>}, {pipeline_mode = #tpu.pipeline_mode<synchronous>, transform_indices = @transform_3, window_bounds = array<i64: 128, 128>}, {pipeline_mode = #tpu.pipeline_mode<synchronous>, transform_indices = @transform_4, window_bounds = array<i64: 1, 128>}, {transform_indices = @transform_5, window_bounds = array<i64: 8, 128>}]} {
    %c0 = arith.constant 0 : index
    %c0_0 = arith.constant 0 : index
    %0 = vector.load %arg1[%c0, %c0_0] : memref<8x128xf32, #tpu.memory_space<vmem>>, vector<8x128xf32>
    %c0_1 = arith.constant 0 : index
    %c0_2 = arith.constant 0 : index
    %1 = vector.load %arg2[%c0_1, %c0_2] : memref<128x256xf32, #tpu.memory_space<vmem>>, vector<128x256xf32>
    %cst = arith.constant dense<0.000000e+00> : vector<8x256xf32>
    %2 = tpu.matmul %0, %1, %cst {dimension_numbers = #tpu.dot_dimension_numbers<[1], [0], [0], [1], [0, 0, 1, 1], [], []>} : vector<8x128xf32>, vector<128x256xf32>, vector<8x256xf32> -> vector<8x256xf32>
    %c0_3 = arith.constant 0 : index
    %c0_4 = arith.constant 0 : index
    %3 = vector.load %arg3[%c0_3, %c0_4] : memref<1x256xf32, #tpu.memory_space<vmem>>, vector<1x256xf32>
    %4 = vector.broadcast %3 : vector<1x256xf32> to vector<8x256xf32>
    %5 = arith.addf %2, %4 : vector<8x256xf32>
    %6 = vector.extract_strided_slice %5 {offsets = [0, 0], sizes = [8, 128], strides = [1, 1]} : vector<8x256xf32> to vector<8x128xf32>
    %7 = vector.extract_strided_slice %5 {offsets = [0, 128], sizes = [8, 128], strides = [1, 1]} : vector<8x256xf32> to vector<8x128xf32>
    %cst_5 = arith.constant 0.000000e+00 : f32
    %8 = vector.broadcast %cst_5 : f32 to vector<8x128xf32>
    %9 = arith.maximumf %6, %8 : vector<8x128xf32>
    %10 = arith.mulf %9, %7 : vector<8x128xf32>
    %c0_6 = arith.constant 0 : index
    %c0_7 = arith.constant 0 : index
    %11 = vector.load %arg4[%c0_6, %c0_7] : memref<128x128xf32, #tpu.memory_space<vmem>>, vector<128x128xf32>
    %cst_8 = arith.constant dense<0.000000e+00> : vector<8x128xf32>
    %12 = tpu.matmul %10, %11, %cst_8 {dimension_numbers = #tpu.dot_dimension_numbers<[1], [0], [0], [1], [0, 0, 1, 1], [], []>} : vector<8x128xf32>, vector<128x128xf32>, vector<8x128xf32> -> vector<8x128xf32>
    %c0_9 = arith.constant 0 : index
    %c0_10 = arith.constant 0 : index
    %13 = vector.load %arg5[%c0_9, %c0_10] : memref<1x128xf32, #tpu.memory_space<vmem>>, vector<1x128xf32>
    %14 = vector.broadcast %13 : vector<1x128xf32> to vector<8x128xf32>
    %15 = arith.addf %12, %14 : vector<8x128xf32>
    %c0_11 = arith.constant 0 : index
    %c0_12 = arith.constant 0 : index
    %16 = vector.load %arg6[%c0_11, %c0_12] : memref<8x128xf32, #tpu.memory_space<vmem>>, vector<8x128xf32>
    tpu.vector_store %arg6[%c0_11, %c0_12], %15 {strides = array<i32>} : memref<8x128xf32, #tpu.memory_space<vmem>>, vector<8x128xf32>,
    return
  }
  func.func @transform_0(%arg0: i32) -> (i32, i32) {
    %c0_i32 = arith.constant 0 : i32
    %c0_i32_0 = arith.constant 0 : i32
    return %arg0, %c0_i32 : i32, i32
  }
  func.func @transform_1(%arg0: i32) -> (i32, i32) {
    %c0_i32 = arith.constant 0 : i32
    %c0_i32_0 = arith.constant 0 : i32
    %c0_i32_1 = arith.constant 0 : i32
    return %c0_i32, %c0_i32_0 : i32, i32
  }
  func.func @transform_2(%arg0: i32) -> (i32, i32) {
    %c0_i32 = arith.constant 0 : i32
    %c0_i32_0 = arith.constant 0 : i32
    %c0_i32_1 = arith.constant 0 : i32
    return %c0_i32, %c0_i32_0 : i32, i32
  }
  func.func @transform_3(%arg0: i32) -> (i32, i32) {
    %c0_i32 = arith.constant 0 : i32
    %c0_i32_0 = arith.constant 0 : i32
    %c0_i32_1 = arith.constant 0 : i32
    return %c0_i32, %c0_i32_0 : i32, i32
  }
  func.func @transform_4(%arg0: i32) -> (i32, i32) {
    %c0_i32 = arith.constant 0 : i32
    %c0_i32_0 = arith.constant 0 : i32
    %c0_i32_1 = arith.constant 0 : i32
    return %c0_i32, %c0_i32_0 : i32, i32
  }
  func.func @transform_5(%arg0: i32) -> (i32, i32) {
    %c0_i32 = arith.constant 0 : i32
    %c0_i32_0 = arith.constant 0 : i32
    return %arg0, %c0_i32 : i32, i32
  }
}

</mosaic_0001>

<bundles_post_ra>
// kernel: tile.27
= control target key start
LH: loop header
LB: loop body
LE: loop exit
PB: predicated region body
PF: predicated region fallthrough
CT: control target
= control target key end

     0   :  { %vm8_vm0 = vcmask 261120   ;;  %s40_s8 = smov 32   ;;  %s41_s9 = smov 64   ;;  %vm14_vm1 = vcmask 1048320   ;;  %vm20_vm2 = vcmask 785920   ;;  %vm26_vm3 = vcmask 523520   ;;  %s58_s0 = inlined_call_operand.vmem [shape: f32[4,32], index: 0, kind: input, shape index: {}]   ;;  %s59_s1 = inlined_call_operand.vmem [shape: f32[1,128], index: 1, kind: output, shape index: {}]  }
   0x1   :  { %v5_v0 = vld [vmem:[%s58_s0] sm:$0xf]  ;;  %s39_s0 = smov 96  }
   0x2   :  { %6 = vst [vmem:[#allocation1] sm:$0xf] %v5_v0 }
   0x9   :  { %v11_v1 = vld [vmem:[#allocation1 + $0x3] sm:$0x1]   ;;  %v23_v2 = vld [vmem:[#allocation1 + $0x1] sm:$0x1]   ;;  %v7_v3 = vld [vmem:[#allocation1] sm:$0x1]  }
   0xa   :  { %12 = vrot.lane.b32.xlu0 %v11_v1, %s39_s0  ;;  %24 = vrot.lane.b32.xlu1 %v23_v2, %s40_s8  ;;  %v17_v4 = vld [vmem:[#allocation1 + $0x2] sm:$0x1]   ;;  %9 = vst.msk [vmem:[#allocation0] sm:$0x1] %vm8_vm0, %v7_v3  }
   0xe   :  { %18 = vrot.lane.b32.xlu0 %v17_v4, %s41_s9 }
  0x7c   :  { %v13_v5 = vpop.permute.xlu0 %12   ;;  %v25_v6 = vpop.permute.xlu1 %24  }
  0x7d   :  { %15 = vst.msk [vmem:[#allocation0] sm:$0x1] %vm14_vm1, %v13_v5  }
  0x80   :  { %v19_v7 = vpop.permute.xlu0 %18  }
  0x81   :  { %21 = vst.msk [vmem:[#allocation0] sm:$0x1] %vm20_vm2, %v19_v7  }
  0x82   :  { %27 = vst.msk [vmem:[#allocation0] sm:$0x1] %vm26_vm3, %v25_v6  }
  0x89   :  { %v32_v8 = vld [vmem:[#allocation0] sm:$0x1] }
  0x8a   :  { %35 = vst [vmem:[%s59_s1] sm:$0x1] %v32_v8 }

// kernel: sparse_attention.1
= control target key start
LH: loop header
LB: loop body
LE: loop exit
PB: predicated region body
PF: predicated region fallthrough
CT: control target
= control target key end

     0   :  { %v328_v4 = vmov 0.0   ;;  %vm329_vm0 = vmmov 0   ;;  %v55_v50 = vlaneseq  ;;  %s534_s0 = inlined_call_operand.vmem [shape: f32[4,128], index: 0, kind: input, shape index: {}]   ;;  %s535_s1 = inlined_call_operand.vmem [shape: f32[128,256], index: 1, kind: input, shape index: {}]   ;;  %s536_s2 = inlined_call_operand.vmem [shape: f32[1,256], index: 2, kind: input, shape index: {}]   ;;  %s537_s3 = inlined_call_operand.vmem [shape: f32[128,128], index: 3, kind: input, shape index: {}]   ;;  %s538_s4 = inlined_call_operand.vmem [shape: f32[1,128], index: 4, kind: input, shape index: {}]   ;;  %s539_s5 = inlined_call_operand.vmem [shape: f32[4,128], index: 5, kind: output, shape index: {}]  }
   0x1   :  { %v52_v0 = vld [vmem:[%s535_s1 + $0xf8] sm:$0xff]  ;;  %v51_v1 = vld [vmem:[%s535_s1 + $0xf0] sm:$0xff]  ;;  %v50_v2 = vld [vmem:[%s535_s1 + $0xe8] sm:$0xff]  ;;  %129 = vmatprep.mubr.f32.mxu0 %v328_v4  ;;  %291 = vmatprep.subr.mxu1 %v328_v4 }
   0x2   :  { %65 = vmatprep.subr.mxu0 %v52_v0  ;;  %v49_v3 = vld [vmem:[%s535_s1 + $0xe0] sm:$0xff]  ;;  %v48_v5 = vld [vmem:[%s535_s1 + $0xd8] sm:$0xff]  ;;  %v47_v6 = vld [vmem:[%s535_s1 + $0xd0] sm:$0xff]  ;;  %323 = vmatprep.mubr.msk.f32.mxu1 %vm329_vm0, %v328_v4  ;;  %v56_v51 = vshrl.u32 %v55_v50, 7 }
   0x3   :  { %66 = vmatpush1.msra.mxu0 %v51_v1  ;;  %v46_v7 = vld [vmem:[%s535_s1 + $0xc8] sm:$0xff]  ;;  %v45_v8 = vld [vmem:[%s535_s1 + $0xc0] sm:$0xff]  ;;  %v44_v9 = vld [vmem:[%s535_s1 + $0xb8] sm:$0xff] }
   0x4   :  { %67 = vmatprep.subr.mxu0 %v50_v2  ;;  %v43_v10 = vld [vmem:[%s535_s1 + $0xb0] sm:$0xff]  ;;  %v42_v11 = vld [vmem:[%s535_s1 + $0xa8] sm:$0xff]  ;;  %v41_v12 = vld [vmem:[%s535_s1 + $0xa0] sm:$0xff]  ;;  %v57_v52 = vsub.s32 0, %v56_v51  ;;  %v61_v54 = vsub.s32 1, %v56_v51 }
   0x5   :  { %68 = vmatpush1.msra.mxu0 %v49_v3  ;;  %v40_v13 = vld [vmem:[%s535_s1 + $0x98] sm:$0xff]  ;;  %v39_v14 = vld [vmem:[%s535_s1 + $0x90] sm:$0xff]  ;;  %v38_v17 = vld [vmem:[%s535_s1 + $0x88] sm:$0xff] }
   0x6   :  { %69 = vmatprep.subr.mxu0 %v48_v5  ;;  %v153_v15 = vld [vmem:[%s537_s3 + $0x78] sm:$0xff]  ;;  %v152_v16 = vld [vmem:[%s537_s3 + $0x70] sm:$0xff]  ;;  %v37_v18 = vld [vmem:[%s535_s1 + $0x80] sm:$0xff] }
   0x7   :  { %70 = vmatpush1.msra.mxu0 %v47_v6  ;;  %292 = vmatpush3.msra.mxu1 %v153_v15  ;;  %v151_v19 = vld [vmem:[%s537_s3 + $0x68] sm:$0xff]  ;;  %v36_v20 = vld [vmem:[%s535_s1 + $0x78] sm:$0xff]  ;;  %v35_v21 = vld [vmem:[%s535_s1 + $0x70] sm:$0xff] }
   0x8   :  { %71 = vmatprep.subr.mxu0 %v46_v7  ;;  %293 = vmatprep.subr.mxu1 %v328_v4  ;;  %v150_v22 = vld [vmem:[%s537_s3 + $0x60] sm:$0xff]  ;;  %v34_v23 = vld [vmem:[%s535_s1 + $0x68] sm:$0xff]  ;;  %v149_v25 = vld [vmem:[%s537_s3 + $0x58] sm:$0xff] }
   0x9   :  { %72 = vmatpush1.msra.mxu0 %v45_v8  ;;  %294 = vmatpush3.msra.mxu1 %v152_v16  ;;  %v33_v24 = vld [vmem:[%s535_s1 + $0x60] sm:$0xff]  ;;  %v32_v26 = vld [vmem:[%s535_s1 + $0x58] sm:$0xff]  ;;  %v31_v27 = vld [vmem:[%s535_s1 + $0x50] sm:$0xff] }
   0xa   :  { %73 = vmatprep.subr.mxu0 %v44_v9  ;;  %295 = vmatprep.subr.mxu1 %v328_v4  ;;  %v148_v28 = vld [vmem:[%s537_s3 + $0x50] sm:$0xff]  ;;  %v30_v29 = vld [vmem:[%s535_s1 + $0x48] sm:$0xff]  ;;  %v29_v30 = vld [vmem:[%s535_s1 + $0x40] sm:$0xff] }
   0xb   :  { %74 = vmatpush1.msra.mxu0 %v43_v10  ;;  %296 = vmatpush3.msra.mxu1 %v151_v19  ;;  %v147_v31 = vld [vmem:[%s537_s3 + $0x48] sm:$0xff]  ;;  %v28_v32 = vld [vmem:[%s535_s1 + $0x38] sm:$0xff]  ;;  %v27_v33 = vld [vmem:[%s535_s1 + $0x30] sm:$0xff] }
   0xc   :  { %75 = vmatprep.subr.mxu0 %v42_v11  ;;  %297 = vmatprep.subr.mxu1 %v328_v4  ;;  %v146_v34 = vld [vmem:[%s537_s3 + $0x40] sm:$0xff]  ;;  %v26_v35 = vld [vmem:[%s535_s1 + $0x28] sm:$0xff]  ;;  %v145_v37 = vld [vmem:[%s537_s3 + $0x38] sm:$0xff] }
   0xd   :  { %76 = vmatpush1.msra.mxu0 %v41_v12  ;;  %298 = vmatpush3.msra.mxu1 %v150_v22  ;;  %v25_v36 = vld [vmem:[%s535_s1 + $0x20] sm:$0xff]  ;;  %v24_v38 = vld [vmem:[%s535_s1 + $0x18] sm:$0xff]  ;;  %v23_v39 = vld [vmem:[%s535_s1 + $0x10] sm:$0xff] }
   0xe   :  { %77 = vmatprep.subr.mxu0 %v40_v13  ;;  %299 = vmatprep.subr.mxu1 %v328_v4  ;;  %v144_v40 = vld [vmem:[%s537_s3 + $0x30] sm:$0xff]  ;;  %v22_v41 = vld [vmem:[%s535_s1 + $0x8] sm:$0xff]  ;;  %v21_v42 = vld [vmem:[%s535_s1] sm:$0xff] }
   0xf   :  { %78 = vmatpush1.msra.mxu0 %v39_v14  ;;  %300 = vmatpush3.msra.mxu1 %v149_v25  ;;  %v143_v43 = vld [vmem:[%s537_s3 + $0x28] sm:$0xff]  ;;  %v20_v44 = vld [vmem:[%s534_s0] sm:$0xff]  ;;  %v141_v46 = vld [vmem:[%s537_s3 + $0x18] sm:$0xff] }
  0x10   :  { %79 = vmatprep.subr.mxu0 %v38_v17  ;;  %301 = vmatprep.subr.mxu1 %v328_v4  ;;  %v142_v45 = vld [vmem:[%s537_s3 + $0x20] sm:$0xff]  ;;  %v140_v47 = vld [vmem:[%s537_s3 + $0x10] sm:$0xff]  ;;  %v139_v48 = vld [vmem:[%s537_s3 + $0x8] sm:$0xff] }
  0x11   :  { %80 = vmatpush1.msra.mxu0 %v37_v18  ;;  %302 = vmatpush3.msra.mxu1 %v148_v28  ;;  %v138_v49 = vld [vmem:[%s537_s3] sm:$0xff] }
  0x12   :  { %81 = vmatprep.subr.mxu0 %v36_v20  ;;  %303 = vmatprep.subr.mxu1 %v328_v4  ;;  %v53_v53 = vld [vmem:[%s536_s2] sm:$0x3] }
  0x13   :  { %82 = vmatpush1.msra.mxu0 %v35_v21  ;;  %304 = vmatpush3.msra.mxu1 %v147_v31  ;;  %v58_v55 = vrot.slane %v53_v53, %v57_v52  ;;  %v62_v56 = vrot.slane %v53_v53, %v61_v54  ;;  %v273_v63 = vld [vmem:[%s538_s4] ss:$0 sm:$0xff] }
  0x14   :  { %83 = vmatprep.subr.mxu0 %v34_v23  ;;  %305 = vmatprep.subr.mxu1 %v328_v4 }
  0x15   :  { %84 = vmatpush1.msra.mxu0 %v33_v24  ;;  %306 = vmatpush3.msra.mxu1 %v146_v34 }
  0x16   :  { %85 = vmatprep.subr.mxu0 %v32_v26  ;;  %307 = vmatprep.subr.mxu1 %v328_v4 }
  0x17   :  { %86 = vmatpush1.msra.mxu0 %v31_v27  ;;  %308 = vmatpush3.msra.mxu1 %v145_v37 }
  0x18   :  { %87 = vmatprep.subr.mxu0 %v30_v29  ;;  %309 = vmatprep.subr.mxu1 %v328_v4 }
  0x19   :  { %88 = vmatpush1.msra.mxu0 %v29_v30  ;;  %310 = vmatpush3.msra.mxu1 %v144_v40 }
  0x1a   :  { %89 = vmatprep.subr.mxu0 %v28_v32  ;;  %311 = vmatprep.subr.mxu1 %v328_v4 }
  0x1b   :  { %90 = vmatpush1.msra.mxu0 %v27_v33  ;;  %312 = vmatpush3.msra.mxu1 %v143_v43 }
  0x1c   :  { %91 = vmatprep.subr.mxu0 %v26_v35  ;;  %313 = vmatprep.subr.mxu1 %v328_v4 }
  0x1d   :  { %92 = vmatpush1.msra.mxu0 %v25_v36  ;;  %314 = vmatpush3.msra.mxu1 %v142_v45 }
  0x1e   :  { %93 = vmatprep.subr.mxu0 %v24_v38  ;;  %315 = vmatprep.subr.mxu1 %v328_v4 }
  0x1f   :  { %94 = vmatpush1.msra.mxu0 %v23_v39  ;;  %316 = vmatpush3.msra.mxu1 %v141_v46 }
  0x20   :  { %95 = vmatprep.subr.mxu0 %v22_v41  ;;  %317 = vmatprep.subr.mxu1 %v328_v4 }
  0x21   :  { %96 = vmatpush1.msra.mxu0 %v21_v42  ;;  %318 = vmatpush3.msra.mxu1 %v140_v47 }
  0x22   :  { %130 = vmatmul.mubr.f32.vlgmr.msra.gmra.mxu0 %v20_v44  ;;  %319 = vmatprep.subr.mxu1 %v328_v4 }
  0x23   :  { %320 = vmatpush3.msra.mxu1 %v139_v48 }
  0x24   :  { %321 = vmatprep.subr.mxu1 %v328_v4 }
  0x25   :  { %322 = vmatpush3.msra.mxu1 %v138_v49 }
  0xe2   :  { %v131_v57 = vpop.f32.mrf.mxu0 }
  0xe3   :  { %v132_v58 = vadd.f32 %v131_v57, %v58_v55 }
  0xe4   :  { %v133_v59 = vpop.f32.mrf.mxu0 }
  0xe5   :  { %v136_v60 = vmax.f32 %v132_v58, 0.0  ;;  %v134_v61 = vadd.f32 %v133_v59, %v62_v56 }
  0xe7   :  { %v137_v62 = vmul.f32 %v136_v60, %v134_v61 }
  0xe9   :  { %324 = vmatmul.mubr.f32.vlgmr.msra.gmra.mxu1 %v137_v62 }
 0x1a9   :  { %v227_v0 = vpop.f32.mrf.mxu1 }
 0x1aa   :  { %v228_v1 = vadd.f32 %v273_v63, %v227_v0 }
 0x1ab   :  { %v325_v2 = vpop.f32.mrf.mxu1 }
 0x1ac   :  { %231 = vst [vmem:[#allocation2] sm:$0xff] %v228_v1 }
 0x1b3   :  { %v250_v3 = vld [vmem:[#allocation2] sm:$0xf] }
 0x1b4   :  { %251 = vst [vmem:[%s539_s5] sm:$0xf] %v250_v3 }

</bundles_post_ra>
